<compile_context>
chip_gen: v6e
topology: v6e:2x2x1
jax: 0.10.0
libtpu: 0.0.40
codegen_flags: <defaults>
</compile_context>

<pallas_src>
import jax
import jax.numpy as jnp
from jax.experimental import pallas as pl
from jax.experimental.pallas import tpu as pltpu


def _round_up(x, m):
    return (x + m - 1) // m * m


# --------------------------------------------------------------------------- #
# Kernel
# --------------------------------------------------------------------------- #
def fused_mlp_kernel(x_ref, w_ref, b_ref, o_ref):
    # One MXU matmul (f32 accumulation) + one VPU bias add, all in VMEM.
    o_ref[...] = (
        jnp.dot(x_ref[...], w_ref[...], preferred_element_type=jnp.float32)
        + b_ref[...]
    ).astype(o_ref.dtype)


# --------------------------------------------------------------------------- #
# Parameter handling
# --------------------------------------------------------------------------- #
def init_params(key, num_features, seq_len, hidden_dim, target_size):
    """Deterministic init mimicking nn.Linear's U(-1/sqrt(fan_in), 1/sqrt(fan_in)).
    Weights stored as (in, out) = torch weight transposed. Biases kept 2D (1, out)."""
    d_in = seq_len * num_features
    dims = [(d_in, hidden_dim),
            (hidden_dim, hidden_dim // 2),
            (hidden_dim // 2, target_size)]
    params = []
    for fin, fout in dims:
        kw, kb, key = jax.random.split(key, 3)
        bound = 1.0 / (fin ** 0.5)
        w = jax.random.uniform(kw, (fin, fout), jnp.float32, -bound, bound)
        b = jax.random.uniform(kb, (1, fout), jnp.float32, -bound, bound)
        params += [w, b]
    return tuple(params)


def fuse_params(params):
    """Collapse the 3 chained linears into one matmul + bias.
    Exact because forward() applies no nonlinearity / bn between the linears."""
    w1, b1, w2, b2, w3, b3 = params
    w = w1 @ w2 @ w3                  # (d_in, target_size)
    b = (b1 @ w2 + b2) @ w3 + b3      # (1, target_size)
    return w, b


# --------------------------------------------------------------------------- #
# Tiling / forward
# --------------------------------------------------------------------------- #
def _batch_tiling(B, d_in, d_out, *, block_b, vmem_budget):
    """Rows per batch tile and number of tiles. Never pads the batch: a single
    tile spans the full extent when B fits, otherwise the ragged last tile is
    masked by Pallas."""
    itemsize = 4  # float32
    row_bytes = 2 * (d_in + d_out) * itemsize          # double-buffered x + out rows
    const_bytes = 2 * (d_in + 1) * d_out * itemsize    # fused weight + bias (worst case 2x)
    tb_cap = max(8, (vmem_budget - const_bytes) // row_bytes // 8 * 8)
    tb = min(block_b, tb_cap)
    if B > tb:
        return tb, pl.cdiv(B, tb)
    if B >= 256:
        # Split into >=2 tiles so the "parallel" batch axis can shard across
        # v7x's two TensorCores (no-op on 1-TC v5e/v6e, overhead is negligible).
        tb2 = _round_up(pl.cdiv(B, 2), 8)
        return tb2, pl.cdiv(B, tb2)
    return B, 1  # single full-extent tile


def mlp_predictor_forward(features, fused_params, *, seq_len, num_features,
                          block_b=1024, vmem_budget=24 * 2**20):
    """features: (B, seq_len, num_features) float32 -> (B, target_size) float32."""
    B = features.shape[0]
    d_in = seq_len * num_features
    x = features.reshape(B, d_in)      # matches torch .view(-1, seq_len*num_features)

    w, b = fused_params
    d_out = w.shape[1]

    tb, n_tiles = _batch_tiling(B, d_in, d_out,
                                block_b=block_b, vmem_budget=vmem_budget)

    # Explicit scoped-VMEM limit: raises v5e's 16 MiB default, stays <= 48 MiB
    # so it is always below v7x's 64 MiB physical VMEM.
    vmem_est = (2 * tb * (d_in + d_out) + 2 * (d_in + 1) * d_out) * 4
    vmem_limit = int(min(max(2 * vmem_est, 32 * 2**20), 48 * 2**20))

    cost = pl.CostEstimate(
        flops=2 * B * d_in * d_out,
        transcendentals=0,
        bytes_accessed=4 * (B * d_in + (d_in + 1) * d_out + B * d_out),
    )

    def call(weight_pipeline_mode):
        wkw = ({} if weight_pipeline_mode is None
               else {"pipeline_mode": weight_pipeline_mode})
        return pl.pallas_call(
            fused_mlp_kernel,
            out_shape=jax.ShapeDtypeStruct((B, d_out), jnp.float32),
            grid=(n_tiles,),
            in_specs=[
                pl.BlockSpec((tb, d_in), lambda i: (i, 0)),          # activations: tiled over B
                pl.BlockSpec((d_in, d_out), lambda i: (0, 0), **wkw),  # fused weight: VMEM-resident
                pl.BlockSpec((1, d_out), lambda i: (0, 0), **wkw),     # fused bias:   VMEM-resident
            ],
            out_specs=pl.BlockSpec((tb, d_out), lambda i: (i, 0)),
            compiler_params=pltpu.CompilerParams(
                dimension_semantics=("parallel",),   # shard batch tiles across TCs on v7x
                vmem_limit_bytes=vmem_limit,
            ),
            cost_estimate=cost,
        )(x, w, b)

    try:
        # Single-buffer the grid-invariant operands (index_map is constant, so
        # they are never re-fetched; double-buffering them only wastes VMEM).
        return call(pl.Buffered(1))
    except Exception:
        # TODO(synk): this jax build rejected pipeline_mode=pl.Buffered(1); fall
        # back to default double-buffering (already accounted for in vmem_budget).
        return call(None)


def reference_forward(features, params, *, seq_len, num_features):
    """Plain-JAX reference matching the PyTorch forward (3 separate linears)."""
    B = features.shape[0]
    x = features.reshape(B, seq_len * num_features)
    w1, b1, w2, b2, w3, b3 = params
    h1 = x @ w1 + b1
    h2 = h1 @ w2 + b2
    return h2 @ w3 + b3


# --------------------------------------------------------------------------- #
# Demo / self-test
# --------------------------------------------------------------------------- #
if __name__ == "__main__":
    # Small shapes consistent with the module.
    B, num_features, seq_len, hidden_dim, target_size = 2, 4, 8, 32, 6

    key = jax.random.PRNGKey(0)
    k_x, k_p = jax.random.split(key)
    features = jax.random.normal(k_x, (B, seq_len, num_features), jnp.float32)
    params = init_params(k_p, num_features, seq_len, hidden_dim, target_size)

    # One-time algebraic fusion (would live at module init in real use).
    fused_params = fuse_params(params)

    out = mlp_predictor_forward(
        features, fused_params, seq_len=seq_len, num_features=num_features,
    )
    out = jax.block_until_ready(out)

    ref = reference_forward(features, params, seq_len=seq_len, num_features=num_features)
    assert out.shape == (B, target_size), out.shape
    assert jnp.allclose(out, ref, atol=1e-4, rtol=1e-4), "mismatch vs reference"

    print("KERNEL_OK")
</pallas_src>

<mosaic_0001>
module attributes {stable_mosaic.version = 11 : i64} {
  func.func @fused_mlp_kernel(%arg0: i32, %arg1: memref<2x32xf32, #tpu.memory_space<vmem>>, %arg2: memref<32x6xf32, #tpu.memory_space<vmem>>, %arg3: memref<1x6xf32, #tpu.memory_space<vmem>>, %arg4: memref<2x6xf32, #tpu.memory_space<vmem>>) attributes {dimension_semantics = [#tpu.dimension_semantics<parallel>], iteration_bounds = array<i64: 1>, scalar_prefetch = 0 : i64, scratch_operands = 0 : i64, tpu.core_type = #tpu.core_type<tc>, window_params = [{transform_indices = @transform_0, window_bounds = array<i64: 2, 32>}, {pipeline_mode = #tpu.pipeline_mode<synchronous>, transform_indices = @transform_1, window_bounds = array<i64: 32, 6>}, {pipeline_mode = #tpu.pipeline_mode<synchronous>, transform_indices = @transform_2, window_bounds = array<i64: 1, 6>}, {transform_indices = @transform_3, window_bounds = array<i64: 2, 6>}]} {
    %c0 = arith.constant 0 : index
    %c0_0 = arith.constant 0 : index
    %0 = vector.load %arg1[%c0, %c0_0] : memref<2x32xf32, #tpu.memory_space<vmem>>, vector<2x32xf32>
    %c0_1 = arith.constant 0 : index
    %c0_2 = arith.constant 0 : index
    %1 = vector.load %arg2[%c0_1, %c0_2] : memref<32x6xf32, #tpu.memory_space<vmem>>, vector<32x6xf32>
    %cst = arith.constant dense<0.000000e+00> : vector<2x6xf32>
    %2 = tpu.matmul %0, %1, %cst {dimension_numbers = #tpu.dot_dimension_numbers<[1], [0], [0], [1], [0, 0, 1, 1], [], []>} : vector<2x32xf32>, vector<32x6xf32>, vector<2x6xf32> -> vector<2x6xf32>
    %c0_3 = arith.constant 0 : index
    %c0_4 = arith.constant 0 : index
    %3 = vector.load %arg3[%c0_3, %c0_4] : memref<1x6xf32, #tpu.memory_space<vmem>>, vector<1x6xf32>
    %4 = vector.broadcast %3 : vector<1x6xf32> to vector<2x6xf32>
    %5 = arith.addf %2, %4 : vector<2x6xf32>
    %c0_5 = arith.constant 0 : index
    %c0_6 = arith.constant 0 : index
    %6 = vector.load %arg4[%c0_5, %c0_6] : memref<2x6xf32, #tpu.memory_space<vmem>>, vector<2x6xf32>
    tpu.vector_store %arg4[%c0_5, %c0_6], %5 {strides = array<i32>} : memref<2x6xf32, #tpu.memory_space<vmem>>, vector<2x6xf32>,
    return
  }
  func.func @transform_0(%arg0: i32) -> (i32, i32) {
    %c0_i32 = arith.constant 0 : i32
    %c0_i32_0 = arith.constant 0 : i32
    return %arg0, %c0_i32 : i32, i32
  }
  func.func @transform_1(%arg0: i32) -> (i32, i32) {
    %c0_i32 = arith.constant 0 : i32
    %c0_i32_0 = arith.constant 0 : i32
    %c0_i32_1 = arith.constant 0 : i32
    return %c0_i32, %c0_i32_0 : i32, i32
  }
  func.func @transform_2(%arg0: i32) -> (i32, i32) {
    %c0_i32 = arith.constant 0 : i32
    %c0_i32_0 = arith.constant 0 : i32
    %c0_i32_1 = arith.constant 0 : i32
    return %c0_i32, %c0_i32_0 : i32, i32
  }
  func.func @transform_3(%arg0: i32) -> (i32, i32) {
    %c0_i32 = arith.constant 0 : i32
    %c0_i32_0 = arith.constant 0 : i32
    return %arg0, %c0_i32 : i32, i32
  }
}

module attributes {stable_mosaic.version = 11 : i64} {
  func.func @fused_mlp_kernel(%arg0: i32, %arg1: memref<2x32xf32, #tpu.memory_space<vmem>>, %arg2: memref<32x6xf32, #tpu.memory_space<vmem>>, %arg3: memref<1x6xf32, #tpu.memory_space<vmem>>, %arg4: memref<2x6xf32, #tpu.memory_space<vmem>>) attributes {dimension_semantics = [#tpu.dimension_semantics<parallel>], iteration_bounds = array<i64: 1>, scalar_prefetch = 0 : i64, scratch_operands = 0 : i64, tpu.core_type = #tpu.core_type<tc>, window_params = [{transform_indices = @transform_0, window_bounds = array<i64: 2, 32>}, {pipeline_mode = #tpu.pipeline_mode<synchronous>, transform_indices = @transform_1, window_bounds = array<i64: 32, 6>}, {pipeline_mode = #tpu.pipeline_mode<synchronous>, transform_indices = @transform_2, window_bounds = array<i64: 1, 6>}, {transform_indices = @transform_3, window_bounds = array<i64: 2, 6>}]} {
    %c0 = arith.constant 0 : index
    %c0_0 = arith.constant 0 : index
    %0 = vector.load %arg1[%c0, %c0_0] : memref<2x32xf32, #tpu.memory_space<vmem>>, vector<2x32xf32>
    %c0_1 = arith.constant 0 : index
    %c0_2 = arith.constant 0 : index
    %1 = vector.load %arg2[%c0_1, %c0_2] : memref<32x6xf32, #tpu.memory_space<vmem>>, vector<32x6xf32>
    %cst = arith.constant dense<0.000000e+00> : vector<2x6xf32>
    %2 = tpu.matmul %0, %1, %cst {dimension_numbers = #tpu.dot_dimension_numbers<[1], [0], [0], [1], [0, 0, 1, 1], [], []>} : vector<2x32xf32>, vector<32x6xf32>, vector<2x6xf32> -> vector<2x6xf32>
    %c0_3 = arith.constant 0 : index
    %c0_4 = arith.constant 0 : index
    %3 = vector.load %arg3[%c0_3, %c0_4] : memref<1x6xf32, #tpu.memory_space<vmem>>, vector<1x6xf32>
    %4 = vector.broadcast %3 : vector<1x6xf32> to vector<2x6xf32>
    %5 = arith.addf %2, %4 : vector<2x6xf32>
    %c0_5 = arith.constant 0 : index
    %c0_6 = arith.constant 0 : index
    %6 = vector.load %arg4[%c0_5, %c0_6] : memref<2x6xf32, #tpu.memory_space<vmem>>, vector<2x6xf32>
    tpu.vector_store %arg4[%c0_5, %c0_6], %5 {strides = array<i32>} : memref<2x6xf32, #tpu.memory_space<vmem>>, vector<2x6xf32>,
    return
  }
  func.func @transform_0(%arg0: i32) -> (i32, i32) {
    %c0_i32 = arith.constant 0 : i32
    %c0_i32_0 = arith.constant 0 : i32
    return %arg0, %c0_i32 : i32, i32
  }
  func.func @transform_1(%arg0: i32) -> (i32, i32) {
    %c0_i32 = arith.constant 0 : i32
    %c0_i32_0 = arith.constant 0 : i32
    %c0_i32_1 = arith.constant 0 : i32
    return %c0_i32, %c0_i32_0 : i32, i32
  }
  func.func @transform_2(%arg0: i32) -> (i32, i32) {
    %c0_i32 = arith.constant 0 : i32
    %c0_i32_0 = arith.constant 0 : i32
    %c0_i32_1 = arith.constant 0 : i32
    return %c0_i32, %c0_i32_0 : i32, i32
  }
  func.func @transform_3(%arg0: i32) -> (i32, i32) {
    %c0_i32 = arith.constant 0 : i32
    %c0_i32_0 = arith.constant 0 : i32
    return %arg0, %c0_i32 : i32, i32
  }
}

</mosaic_0001>

<bundles_post_ra>
// kernel: tpu_custom_call.1
= control target key start
LH: loop header
LB: loop body
LE: loop exit
PB: predicated region body
PF: predicated region fallthrough
CT: control target
= control target key end

     0   :  { %v160_v1 = vmov 0.0   ;;  %vm161_vm0 = vmmov 0   ;;  %s204_s0 = inlined_call_operand.vmem [shape: f32[2,32], index: 0, kind: input, shape index: {}]   ;;  %s205_s1 = inlined_call_operand.vmem [shape: f32[32,6], index: 1, kind: input, shape index: {}]   ;;  %s206_s2 = inlined_call_operand.vmem [shape: f32[1,6], index: 2, kind: input, shape index: {}]   ;;  %s207_s3 = inlined_call_operand.hbm [shape: f32[2,6], index: 3, kind: output, shape index: {}]  }
   0x1   :  { %v19_v0 = vld [vmem:[%s205_s1 + $0x18] sm:$0xff]  ;;  %124 = vmatprep.subr.mxu0 %v160_v1  ;;  %v18_v2 = vld [vmem:[%s205_s1 + $0x10] sm:$0xff]  ;;  %132 = vmatprep.mubr.msk.f32.mxu0 %vm161_vm0, %v160_v1 }
   0x2   :  { %125 = vmatpush3.msra.mxu0 %v19_v0 }
   0x3   :  { %8 = vsyncpa [#allocation3], 0  ;;  %126 = vmatprep.subr.mxu0 %v160_v1  ;;  %v17_v3 = vld [vmem:[%s205_s1 + $0x8] sm:$0xff]  ;;  %v16_v4 = vld [vmem:[%s205_s1] sm:$0xff]  ;;  %vm27_vm1 = vcmask 261120   ;;  %s162_s24 = smov [#allocation2]  }
   0x4   :  { %127 = vmatpush3.msra.mxu0 %v18_v2  ;;  %v15_v5 = vld [vmem:[%s204_s0] sm:$0x3]  ;;  %s109_s25 = sshll.u32 %s162_s24, 4  ;;  %vm101_vm2 = vcmask 41984   ;;  %s110_s25 = int_to_ptr.vmem [resolvable:$true] %s109_s25 }
   0x5   :  { %128 = vmatprep.subr.mxu0 %v160_v1  ;;  %v117_v6 = vld [vmem:[%s206_s2] ss:$0 sm:$0xff]  ;;  %s138_s1 = scalar_lea.vmem %s110_s25, 32  ;;  %p143_p1 = scmp.lt.s32.totalorder %s110_s25, %s110_s25 }
   0x6   :  { %129 = vmatpush3.msra.mxu0 %v17_v3  ;;  %p139_p0 = scmp.ne.s32.totalorder %s110_s25, %s138_s1  ;;  %p144_p2 = scmp.lt.s32.totalorder %s138_s1, %s138_s1 }
   0x7   :  { %130 = vmatprep.subr.mxu0 %v160_v1 }
   0x8   :  { %131 = vmatpush3.msra.mxu0 %v16_v4  ;;  %p145_p3 = por %p144_p2, %p143_p1 }
   0x9   :  { %133 = vmatmul.mubr.msk.f32.vlgmr.msra.gmra.mxu0 %vm27_vm1, %v15_v5 }
   0xa   :  { %p146_p4 = pnand %p145_p3, %p139_p0 }
  0xc9   :  { %v97_v7 = vpop.f32.mrf.mxu0 }
  0xca   :  { %v98_v8 = vadd.f32 %v117_v6, %v97_v7 }
  0xcb   :  { %v134_v9 = vpop.f32.mrf.mxu0 }
  0xcc   :  { %102 = vst.msk [vmem:[#allocation2] sm:$0x3] %vm101_vm2, %v98_v8 }
  0xcd   :  { %149 = shalt.err (!%p146_p4)
}
  0xce   :  { %112 = dma.vmem_to_hbm [thread:$0]  %s110_s25, 32, %s207_s3, [#allocation3]  }
  0xcf   :  { %158 = dma.done.wait [#allocation3], 32  }
  0xd0   :  { %159 = vsyncadd [#allocation3], 4294967264 }
  0xd1   :  { %116 = vsyncpa [#allocation3], 1 }

// kernel: tpu_custom_call.1
= control target key start
LH: loop header
LB: loop body
LE: loop exit
PB: predicated region body
PF: predicated region fallthrough
CT: control target
= control target key end

     0   :  { %v160_v1 = vmov 0.0   ;;  %vm161_vm0 = vmmov 0   ;;  %s204_s0 = inlined_call_operand.vmem [shape: f32[2,32], index: 0, kind: input, shape index: {}]   ;;  %s205_s1 = inlined_call_operand.vmem [shape: f32[32,6], index: 1, kind: input, shape index: {}]   ;;  %s206_s2 = inlined_call_operand.vmem [shape: f32[1,6], index: 2, kind: input, shape index: {}]   ;;  %s207_s3 = inlined_call_operand.hbm [shape: f32[2,6], index: 3, kind: output, shape index: {}]  }
   0x1   :  { %v19_v0 = vld [vmem:[%s205_s1 + $0x18] sm:$0xff]  ;;  %124 = vmatprep.subr.mxu0 %v160_v1  ;;  %v18_v2 = vld [vmem:[%s205_s1 + $0x10] sm:$0xff]  ;;  %132 = vmatprep.mubr.msk.f32.mxu0 %vm161_vm0, %v160_v1 }
   0x2   :  { %125 = vmatpush3.msra.mxu0 %v19_v0 }
   0x3   :  { %8 = vsyncpa [#allocation3], 0  ;;  %126 = vmatprep.subr.mxu0 %v160_v1  ;;  %v17_v3 = vld [vmem:[%s205_s1 + $0x8] sm:$0xff]  ;;  %v16_v4 = vld [vmem:[%s205_s1] sm:$0xff]  ;;  %vm27_vm1 = vcmask 261120   ;;  %s162_s24 = smov [#allocation2]  }
   0x4   :  { %127 = vmatpush3.msra.mxu0 %v18_v2  ;;  %v15_v5 = vld [vmem:[%s204_s0] sm:$0x3]  ;;  %s109_s25 = sshll.u32 %s162_s24, 4  ;;  %vm101_vm2 = vcmask 41984   ;;  %s110_s25 = int_to_ptr.vmem [resolvable:$true] %s109_s25 }
   0x5   :  { %128 = vmatprep.subr.mxu0 %v160_v1  ;;  %v117_v6 = vld [vmem:[%s206_s2] ss:$0 sm:$0xff]  ;;  %s138_s1 = scalar_lea.vmem %s110_s25, 32  ;;  %p143_p1 = scmp.lt.s32.totalorder %s110_s25, %s110_s25 }
   0x6   :  { %129 = vmatpush3.msra.mxu0 %v17_v3  ;;  %p139_p0 = scmp.ne.s32.totalorder %s110_s25, %s138_s1  ;;  %p144_p2 = scmp.lt.s32.totalorder %s138_s1, %s138_s1 }
   0x7   :  { %130 = vmatprep.subr.mxu0 %v160_v1 }
   0x8   :  { %131 = vmatpush3.msra.mxu0 %v16_v4  ;;  %p145_p3 = por %p144_p2, %p143_p1 }
   0x9   :  { %133 = vmatmul.mubr.msk.f32.vlgmr.msra.gmra.mxu0 %vm27_vm1, %v15_v5 }
   0xa   :  { %p146_p4 = pnand %p145_p3, %p139_p0 }
  0xc9   :  { %v97_v7 = vpop.f32.mrf.mxu0 }
  0xca   :  { %v98_v8 = vadd.f32 %v117_v6, %v97_v7 }
  0xcb   :  { %v134_v9 = vpop.f32.mrf.mxu0 }
  0xcc   :  { %102 = vst.msk [vmem:[#allocation2] sm:$0x3] %vm101_vm2, %v98_v8 }
  0xcd   :  { %149 = shalt.err (!%p146_p4)
}
  0xce   :  { %112 = dma.vmem_to_hbm [thread:$0]  %s110_s25, 32, %s207_s3, [#allocation3]  }
  0xcf   :  { %158 = dma.done.wait [#allocation3], 32  }
  0xd0   :  { %159 = vsyncadd [#allocation3], 4294967264 }
  0xd1   :  { %116 = vsyncpa [#allocation3], 1 }

</bundles_post_ra>
